<compile_context>
chip_gen: v7x
topology: tpu7x:2x2x1
jax: 0.10.0
libtpu: 0.0.40
codegen_flags: <defaults>
</compile_context>

<pallas_src>
import itertools

import numpy as np
import jax
import jax.numpy as jnp
from jax import lax
from jax.experimental import pallas as pl
from jax.experimental.pallas import tpu as pltpu

ALPHA = 0.8   # cfg.MODEL.SPARSE_INST.MATCHER.ALPHA (SparseInst default)
BETA = 0.2    # cfg.MODEL.SPARSE_INST.MATCHER.BETA  (SparseInst default)


def _cdiv(a, b):
    return -(-a // b)


def _round_up(x, m):
    return _cdiv(x, m) * m


# ----------------------------- Pallas kernel --------------------------------
def _cost_kernel(pred_ref, tgt_ref, prob_ref, c_ref,
                 num_acc, xsq_acc, tsq_acc, ones_ref):
    # pred_ref: (Nt, HWt)  bf16 raw mask logits for image b, N tile nt, HW tile k
    # tgt_ref : (Mp, HWt)  bf16 resized target masks (zero rows = padding)
    # prob_ref: (Mp, Nt)   matching probabilities (padded rows/cols = 1)
    # c_ref   : (Mp, Nt)   output cost matrix block (written on the last HW tile)
    k = pl.program_id(2)

    @pl.when(k == 0)
    def _init():
        num_acc[...] = jnp.zeros_like(num_acc)
        xsq_acc[...] = jnp.zeros_like(xsq_acc)
        tsq_acc[...] = jnp.zeros_like(tsq_acc)
        ones_ref[...] = jnp.ones_like(ones_ref)   # hoisted ones row (bf16)

    # keep inputs in their streaming dtype (bf16); all accumulation is f32
    x = jax.nn.sigmoid(pred_ref[...])                              # (Nt, HWt)
    t = tgt_ref[...]                                               # (Mp, HWt)

    # partial numerator on the MXU, (Mp, Nt): lane axis = Nt (lane-dense)
    num_acc[...] += lax.dot_general(
        t, x, (((1,), (1,)), ((), ())), preferred_element_type=jnp.float32)

    # sum(x*x) per pred row as a (1, Nt) MXU matmul against the hoisted ones
    # row (no per-step ones re-materialization, no f32 upcast temporaries).
    xsq_acc[...] += lax.dot_general(
        ones_ref[...], x * x, (((1,), (1,)), ((), ())),
        preferred_element_type=jnp.float32)

    # sum(t*t) per target row as an XLU lane reduce with f32 accumulation.
    tsq_acc[...] += jnp.sum(t * t, axis=-1, keepdims=True, dtype=jnp.float32)

    @pl.when(k == pl.num_programs(2) - 1)
    def _finalize():
        score = (2.0 * num_acc[...]) / (tsq_acc[...] + xsq_acc[...] + 0.0001)
        prob = prob_ref[...].astype(jnp.float32)
        # fused pow: s**a * p**b = exp(a*log s + b*log p).  Padded rows/cols
        # have score == 0 -> log 0 = -inf -> exp = 0 (no NaN path).
        c_ref[...] = jnp.exp(ALPHA * jnp.log(score)
                             + BETA * jnp.log(prob)).astype(c_ref.dtype)


# --------------------------- tiling / VMEM policy ----------------------------
def _vmem_limit_bytes():
    """Generation-aware VMEM budget (v5e/v6e: 128 MiB physical, v7x: 64 MiB)."""
    try:
        cap = int(pltpu.get_tpu_info().vmem_capacity_bytes)
    except Exception:
        cap = 64 << 20                       # v7x per-core floor
    return int(min(cap * 3 // 4, 96 << 20))


def _choose_n_tiles(B, N):
    """Split N across a second 'parallel' grid axis only when the batch axis
    alone cannot feed both v7x TensorCores (odd B); splitting re-streams the
    target masks once more, so keep it off otherwise."""
    if B % 2 == 1 and N >= 16:
        return 2
    return 1


def _choose_hw_tiling(hw, rows_per_step, itemsize, vmem_limit):
    """Pick hw_tile (multiple of 128) so the double-buffered pred+tgt blocks
    stay within ~40% of the VMEM budget, minimizing padding of HW."""
    budget = int(0.4 * vmem_limit)
    max_tile = budget // max(1, 2 * rows_per_step * itemsize)
    max_tile = max(128, (max_tile // 128) * 128)
    k_steps = max(1, _cdiv(hw, max_tile))
    hw_tile = _round_up(_cdiv(hw, k_steps), 128)
    return hw_tile, k_steps, hw_tile * k_steps


def cost_matrix_pallas(pred_flat, tgt_flat, prob, n_tiles=None):
    """pred_flat (B,N,HW) raw logits, tgt_flat (B,Mp,HW), prob (B,Mp,N)
    -> cost (B, Mp, N) float32 (rows = targets, cols = predictions)."""
    B, N, HW = pred_flat.shape
    Mp = tgt_flat.shape[1]
    sdt = pred_flat.dtype
    itemsize = jnp.dtype(sdt).itemsize

    if n_tiles is None:
        n_tiles = _choose_n_tiles(B, N)
    n_tile = _round_up(_cdiv(N, n_tiles), 8)
    n_pad = n_tiles * n_tile

    vmem_limit = _vmem_limit_bytes()
    hw_tile, k_steps, hw_pad = _choose_hw_tiling(
        HW, n_tile + Mp, itemsize, vmem_limit)

    # pad HW: pred with a large negative logit (sigmoid -> 0), targets with 0
    if hw_pad != HW:
        pred_flat = jnp.pad(pred_flat, ((0, 0), (0, 0), (0, hw_pad - HW)),
                            constant_values=-1e4)
        tgt_flat = jnp.pad(tgt_flat, ((0, 0), (0, 0), (0, hw_pad - HW)))
    # pad N (only needed when N is split across the second grid axis)
    if n_pad != N:
        pred_flat = jnp.pad(pred_flat, ((0, 0), (0, n_pad - N), (0, 0)),
                            constant_values=-1e4)
        prob = jnp.pad(prob, ((0, 0), (0, 0), (0, n_pad - N)),
                       constant_values=1.0)

    # expose the N tiling as an explicit array axis so the (Mp, n_tile) blocks
    # keep full-extent last dims (no (8,128) divisibility issue on n_tile)
    pred4 = pred_flat.reshape(B, n_tiles, n_tile, hw_pad)
    prob4 = prob.reshape(B, Mp, n_tiles, n_tile).transpose(0, 2, 1, 3)

    out_bytes = B * n_tiles * Mp * n_tile * 4
    cost = pl.CostEstimate(
        flops=2 * B * hw_pad * (Mp * n_pad + n_pad + Mp),
        transcendentals=B * (n_pad * hw_pad + 3 * Mp * n_pad),
        bytes_accessed=(pred4.size * itemsize
                        + tgt_flat.size * itemsize * n_tiles
                        + prob4.size * 4 + out_bytes),
    )

    out4 = pl.pallas_call(
        _cost_kernel,
        out_shape=jax.ShapeDtypeStruct((B, n_tiles, Mp, n_tile), jnp.float32),
        grid_spec=pltpu.PrefetchScalarGridSpec(
            num_scalar_prefetch=0,
            grid=(B, n_tiles, k_steps),
            in_specs=[
                pl.BlockSpec((None, None, n_tile, hw_tile),
                             lambda b, nt, k: (b, nt, 0, k)),
                pl.BlockSpec((None, Mp, hw_tile),
                             lambda b, nt, k: (b, 0, k)),
                pl.BlockSpec((None, None, Mp, n_tile),
                             lambda b, nt, k: (b, nt, 0, 0)),
            ],
            out_specs=pl.BlockSpec((None, None, Mp, n_tile),
                                   lambda b, nt, k: (b, nt, 0, 0)),
            scratch_shapes=[
                pltpu.VMEM((Mp, n_tile), jnp.float32),   # numerator accumulator
                pltpu.VMEM((1, n_tile), jnp.float32),    # sum(x*x) accumulator
                pltpu.VMEM((Mp, 1), jnp.float32),        # sum(t*t) accumulator
                pltpu.VMEM((1, hw_tile), sdt),           # hoisted ones row
            ],
        ),
        compiler_params=pltpu.CompilerParams(
            dimension_semantics=("parallel", "parallel", "arbitrary"),
            vmem_limit_bytes=vmem_limit),
        cost_estimate=cost,
    )(pred4, tgt_flat, prob4)

    # (B, n_tiles, Mp, n_tile) -> (B, Mp, N)
    return out4.transpose(0, 2, 1, 3).reshape(B, Mp, n_pad)[:, :, :N]


# ------------------------------ glue (plain JAX) -----------------------------
def _interp_matrix(out_size, in_size):
    """Interpolation matrix M (out_size, in_size) so that M @ v reproduces
    torch F.interpolate(mode='bilinear', align_corners=False) along one axis.
    Lets the resize run as dense matmuls (MXU) instead of gathers."""
    o = np.arange(out_size, dtype=np.float64)
    s = (o + 0.5) * (in_size / out_size) - 0.5
    s = np.maximum(s, 0.0)
    i0 = np.minimum(np.floor(s).astype(np.int64), in_size - 1)
    i1 = np.minimum(i0 + 1, in_size - 1)
    w1 = np.clip(s - i0, 0.0, 1.0)
    m = np.zeros((out_size, in_size), np.float32)
    np.add.at(m, (np.arange(out_size), i0), 1.0 - w1)
    np.add.at(m, (np.arange(out_size), i1), w1)
    return m


def exact_assignment_maximize(C):
    """Exact assignment (== scipy linear_sum_assignment(maximize=True)) by
    brute force; valid for the small shapes used here.  C is (n_preds, n_tgts)."""
    # TODO(synk): the Hungarian algorithm (scipy.optimize.linear_sum_assignment)
    # has no clean Pallas equivalent; solved exactly on host for small sizes.
    C = np.asarray(C)
    n, m = C.shape
    best, best_rows, best_cols = -np.inf, None, None
    if m <= n:
        for perm in itertools.permutations(range(n), m):
            s = C[list(perm), list(range(m))].sum()
            if s > best:
                best, best_rows, best_cols = s, np.array(perm), np.arange(m)
    else:
        for perm in itertools.permutations(range(m), n):
            s = C[list(range(n)), list(perm)].sum()
            if s > best:
                best, best_rows, best_cols = s, np.arange(n), np.array(perm)
    order = np.argsort(best_rows)
    return best_rows[order].astype(np.int64), best_cols[order].astype(np.int64)


def sparse_inst_matcher_v1(outputs, targets, input_shape, debug_verify=False):
    pred_masks = outputs["pred_masks"]                        # (B, N, H, W)
    pred_probs = jax.nn.sigmoid(outputs["pred_logits"].astype(jnp.float32))
    B, N, H, W = pred_masks.shape
    in_h, in_w = int(input_shape[0]), int(input_shape[1])

    # bf16 streaming dtype for the two HBM-heavy operands; kernel accumulates f32
    sdt = jnp.bfloat16

    n_tgts = [int(targets[i]["labels"].shape[0]) for i in range(B)]
    max_m = max(n_tgts) if n_tgts else 0
    m_pad = max(8, _round_up(max_m, 8))                       # static pad width

    # one pair of interpolation matrices (canvas size is fixed at input_shape)
    R = jnp.asarray(_interp_matrix(H, in_h), sdt)             # (H, in_h)
    Cm = jnp.asarray(_interp_matrix(W, in_w), sdt)            # (W, in_w)

    canvases, probs = [], []
    for i in range(B):
        canvas = jnp.zeros((m_pad, in_h, in_w), sdt)
        prob = jnp.ones((m_pad, N), jnp.float32)              # pad rows -> p=1
        m = n_tgts[i]
        if m > 0:
            tm = targets[i]["masks"].astype(sdt)              # (m, oh, ow)
            oh, ow = tm.shape[1], tm.shape[2]
            canvas = canvas.at[:m, :oh, :ow].set(tm)
            prob = prob.at[:m, :].set(pred_probs[i][:, targets[i]["labels"]].T)
        canvases.append(canvas)
        probs.append(prob)
    canvas_b = jnp.stack(canvases)                            # (B, m_pad, ih, iw)
    prob_b = jnp.stack(probs)                                 # (B, m_pad, N)

    # bilinear resize to (H, W) as two dense bf16 matmuls; contract in the
    # order that produces the smaller intermediate.
    if in_h * W <= H * in_w:
        tmp = jnp.einsum("bmhw,pw->bmhp", canvas_b, Cm)       # (B, m_pad, ih, W)
        tgt_rs = jnp.einsum("oh,bmhp->bmop", R, tmp)          # (B, m_pad, H, W)
    else:
        tmp = jnp.einsum("oh,bmhw->bmow", R, canvas_b)        # (B, m_pad, H, iw)
        tgt_rs = jnp.einsum("bmow,pw->bmop", tmp, Cm)         # (B, m_pad, H, W)
    tgt_flat = tgt_rs.reshape(B, m_pad, H * W).astype(sdt)
    pred_flat = pred_masks.astype(sdt).reshape(B, N, H * W)

    # single batched kernel launch, single device->host transfer
    C_all = jax.block_until_ready(cost_matrix_pallas(pred_flat, tgt_flat, prob_b))
    C_host = np.asarray(jax.device_get(C_all))                # (B, m_pad, N)

    if debug_verify:  # gated out of the hot path; float64 reference check
        xr = 1.0 / (1.0 + np.exp(
            -np.asarray(pred_flat.astype(jnp.float32), np.float64)))
        tr = np.asarray(tgt_flat.astype(jnp.float32), np.float64)
        pr = np.asarray(prob_b, np.float64)
        num = 2.0 * np.einsum("bmh,bnh->bmn", tr, xr)
        den = (tr * tr).sum(-1)[:, :, None] + (xr * xr).sum(-1)[:, None, :] + 0.0001
        C_ref = (num / den) ** ALPHA * pr ** BETA
        # bf16 streaming inside the kernel -> looser tolerance than the f32 path
        np.testing.assert_allclose(C_host, C_ref, rtol=2e-2, atol=1e-3)

    indices = []
    for i in range(B):
        m = n_tgts[i]
        if m == 0:
            indices.append((np.asarray([], np.int64), np.asarray([], np.int64)))
            continue
        # C_host[i] is (targets, preds); torch cost is (preds, targets)
        indices.append(exact_assignment_maximize(C_host[i, :m, :].T))
    return indices


# --------------------------------- main --------------------------------------
if __name__ == "__main__":
    key = jax.random.PRNGKey(0)
    B, N, H, W, NUM_CLASSES = 2, 8, 16, 16, 5
    input_shape = (64, 64)

    k1, k2, k3, k4 = jax.random.split(key, 4)
    pred_masks = jax.random.normal(k1, (B, N, H, W), jnp.float32)
    pred_logits = jax.random.normal(k2, (B, N, NUM_CLASSES), jnp.float32)

    # deterministic synthetic targets (binary masks at their "original" size)
    tgt0_masks = (jax.random.uniform(k3, (3, 50, 60)) > 0.5).astype(jnp.float32)
    tgt1_masks = (jax.random.uniform(k4, (2, 40, 64)) > 0.5).astype(jnp.float32)
    targets = [
        {"labels": jnp.array([1, 3, 0], jnp.int32), "masks": tgt0_masks},
        {"labels": jnp.array([2, 4], jnp.int32), "masks": tgt1_masks},
    ]
    outputs = {"pred_masks": pred_masks, "pred_logits": pred_logits}

    indices = sparse_inst_matcher_v1(outputs, targets, input_shape,
                                     debug_verify=True)
    for (r, c), tgt in zip(indices, targets):
        assert len(r) == len(c) == min(N, int(tgt["labels"].shape[0]))

    # second case exercises the odd-B / N-split ("parallel" N axis) path
    k5, k6, k7 = jax.random.split(jax.random.PRNGKey(1), 3)
    outputs2 = {
        "pred_masks": jax.random.normal(k5, (1, 16, H, W), jnp.float32),
        "pred_logits": jax.random.normal(k6, (1, 16, NUM_CLASSES), jnp.float32),
    }
    targets2 = [{
        "labels": jnp.array([0, 2], jnp.int32),
        "masks": (jax.random.uniform(k7, (2, 48, 56)) > 0.5).astype(jnp.float32),
    }]
    indices2 = sparse_inst_matcher_v1(outputs2, targets2, input_shape,
                                      debug_verify=True)
    assert len(indices2[0][0]) == len(indices2[0][1]) == 2

    print("KERNEL_OK")
</pallas_src>

<mosaic_0001>
module attributes {stable_mosaic.version = 11 : i64} {
  func.func @_cost_kernel(%arg0: i32, %arg1: i32, %arg2: i32, %arg3: memref<1x1x8x256xbf16, #tpu.memory_space<vmem>>, %arg4: memref<1x8x256xbf16, #tpu.memory_space<vmem>>, %arg5: memref<1x1x8x8xf32, #tpu.memory_space<vmem>>, %arg6: memref<1x1x8x8xf32, #tpu.memory_space<vmem>>, %arg7: memref<8x8xf32, #tpu.memory_space<vmem>>, %arg8: memref<1x8xf32, #tpu.memory_space<vmem>>, %arg9: memref<8x1xf32, #tpu.memory_space<vmem>>, %arg10: memref<1x256xbf16, #tpu.memory_space<vmem>>) attributes {dimension_semantics = [#tpu.dimension_semantics<parallel>, #tpu.dimension_semantics<parallel>, #tpu.dimension_semantics<arbitrary>], iteration_bounds = array<i64: 2, 1, 1>, scalar_prefetch = 0 : i64, scratch_operands = 4 : i64, tpu.core_type = #tpu.core_type<tc>, window_params = [{transform_indices = @transform_0, window_bounds = array<i64: 1, 1, 8, 256>}, {transform_indices = @transform_1, window_bounds = array<i64: 1, 8, 256>}, {transform_indices = @transform_2, window_bounds = array<i64: 1, 1, 8, 8>}, {transform_indices = @transform_3, window_bounds = array<i64: 1, 1, 8, 8>}]} {
    %c0_i32 = arith.constant 0 : i32
    %0 = arith.cmpi eq, %arg2, %c0_i32 : i32
    %1 = arith.extui %0 : i1 to i32
    %c0_i32_0 = arith.constant 0 : i32
    %2 = arith.cmpi ne, %1, %c0_i32_0 : i32
    scf.if %2 {
      %cst_26 = arith.constant 0.000000e+00 : f32
      %32 = vector.broadcast %cst_26 : f32 to vector<8x8xf32>
      %c0_27 = arith.constant 0 : index
      %c0_28 = arith.constant 0 : index
      %33 = vector.load %arg7[%c0_27, %c0_28] : memref<8x8xf32, #tpu.memory_space<vmem>>, vector<8x8xf32>
      tpu.vector_store %arg7[%c0_27, %c0_28], %32 {strides = array<i32>} : memref<8x8xf32, #tpu.memory_space<vmem>>, vector<8x8xf32>,
      %cst_29 = arith.constant 0.000000e+00 : f32
      %34 = vector.broadcast %cst_29 : f32 to vector<1x8xf32>
      %c0_30 = arith.constant 0 : index
      %c0_31 = arith.constant 0 : index
      %35 = vector.load %arg8[%c0_30, %c0_31] : memref<1x8xf32, #tpu.memory_space<vmem>>, vector<1x8xf32>
      tpu.vector_store %arg8[%c0_30, %c0_31], %34 {strides = array<i32>} : memref<1x8xf32, #tpu.memory_space<vmem>>, vector<1x8xf32>,
      %cst_32 = arith.constant 0.000000e+00 : f32
      %36 = vector.broadcast %cst_32 : f32 to vector<8x1xf32>
      %c0_33 = arith.constant 0 : index
      %c0_34 = arith.constant 0 : index
      %37 = vector.load %arg9[%c0_33, %c0_34] : memref<8x1xf32, #tpu.memory_space<vmem>>, vector<8x1xf32>
      tpu.vector_store %arg9[%c0_33, %c0_34], %36 {strides = array<i32>} : memref<8x1xf32, #tpu.memory_space<vmem>>, vector<8x1xf32>,
      %cst_35 = arith.constant 1.000000e+00 : bf16
      %38 = vector.broadcast %cst_35 : bf16 to vector<1x256xbf16>
      %c0_36 = arith.constant 0 : index
      %c0_37 = arith.constant 0 : index
      %39 = vector.load %arg10[%c0_36, %c0_37] : memref<1x256xbf16, #tpu.memory_space<vmem>>, vector<1x256xbf16>
      tpu.vector_store %arg10[%c0_36, %c0_37], %38 {strides = array<i32>} : memref<1x256xbf16, #tpu.memory_space<vmem>>, vector<1x256xbf16>,
    } else {
    }
    %c0 = arith.constant 0 : index
    %c0_1 = arith.constant 0 : index
    %c0_2 = arith.constant 0 : index
    %c0_3 = arith.constant 0 : index
    %3 = vector.load %arg3[%c0, %c0_1, %c0_2, %c0_3] : memref<1x1x8x256xbf16, #tpu.memory_space<vmem>>, vector<1x1x8x256xbf16>
    %4 = vector.shape_cast %3 : vector<1x1x8x256xbf16> to vector<8x256xbf16>
    %5 = arith.negf %4 : vector<8x256xbf16>
    %6 = math.exp %5 : vector<8x256xbf16>
    %cst = arith.constant 1.000000e+00 : bf16
    %7 = vector.broadcast %cst : bf16 to vector<8x256xbf16>
    %8 = arith.addf %7, %6 : vector<8x256xbf16>
    %9 = arith.divf %7, %8 : vector<8x256xbf16>
    %c0_4 = arith.constant 0 : index
    %c0_5 = arith.constant 0 : index
    %c0_6 = arith.constant 0 : index
    %10 = vector.load %arg4[%c0_4, %c0_5, %c0_6] : memref<1x8x256xbf16, #tpu.memory_space<vmem>>, vector<1x8x256xbf16>
    %11 = vector.shape_cast %10 : vector<1x8x256xbf16> to vector<8x256xbf16>
    %c0_7 = arith.constant 0 : index
    %c0_8 = arith.constant 0 : index
    %12 = vector.load %arg7[%c0_7, %c0_8] : memref<8x8xf32, #tpu.memory_space<vmem>>, vector<8x8xf32>
    %cst_9 = arith.constant dense<0.000000e+00> : vector<8x8xf32>
    %13 = tpu.matmul %11, %9, %cst_9 {dimension_numbers = #tpu.dot_dimension_numbers<[1], [1], [0], [0], [0, 0, 1, 0], [], []>} : vector<8x256xbf16>, vector<8x256xbf16>, vector<8x8xf32> -> vector<8x8xf32>
    %14 = arith.addf %12, %13 : vector<8x8xf32>
    %c0_10 = arith.constant 0 : index
    %c0_11 = arith.constant 0 : index
    %15 = vector.load %arg7[%c0_10, %c0_11] : memref<8x8xf32, #tpu.memory_space<vmem>>, vector<8x8xf32>
    tpu.vector_store %arg7[%c0_10, %c0_11], %14 {strides = array<i32>} : memref<8x8xf32, #tpu.memory_space<vmem>>, vector<8x8xf32>,
    %c0_12 = arith.constant 0 : index
    %c0_13 = arith.constant 0 : index
    %16 = vector.load %arg8[%c0_12, %c0_13] : memref<1x8xf32, #tpu.memory_space<vmem>>, vector<1x8xf32>
    %c0_14 = arith.constant 0 : index
    %c0_15 = arith.constant 0 : index
    %17 = vector.load %arg10[%c0_14, %c0_15] : memref<1x256xbf16, #tpu.memory_space<vmem>>, vector<1x256xbf16>
    %18 = arith.mulf %9, %9 : vector<8x256xbf16>
    %cst_16 = arith.constant dense<0.000000e+00> : vector<1x8xf32>
    %19 = tpu.matmul %17, %18, %cst_16 {dimension_numbers = #tpu.dot_dimension_numbers<[1], [1], [0], [0], [0, 0, 1, 0], [], []>} : vector<1x256xbf16>, vector<8x256xbf16>, vector<1x8xf32> -> vector<1x8xf32>
    %20 = arith.addf %16, %19 : vector<1x8xf32>
    %c0_17 = arith.constant 0 : index
    %c0_18 = arith.constant 0 : index
    %21 = vector.load %arg8[%c0_17, %c0_18] : memref<1x8xf32, #tpu.memory_space<vmem>>, vector<1x8xf32>
    tpu.vector_store %arg8[%c0_17, %c0_18], %20 {strides = array<i32>} : memref<1x8xf32, #tpu.memory_space<vmem>>, vector<1x8xf32>,
    %c0_19 = arith.constant 0 : index
    %c0_20 = arith.constant 0 : index
    %22 = vector.load %arg9[%c0_19, %c0_20] : memref<8x1xf32, #tpu.memory_space<vmem>>, vector<8x1xf32>
    %23 = arith.mulf %11, %11 : vector<8x256xbf16>
    %24 = arith.extf %23 : vector<8x256xbf16> to vector<8x256xf32>
    %cst_21 = arith.constant dense<0.000000e+00> : vector<8xf32>
    %25 = vector.multi_reduction <add>, %24, %cst_21 [1] : vector<8x256xf32> to vector<8xf32>
    %26 = vector.shape_cast %25 : vector<8xf32> to vector<8x1xf32>
    %27 = arith.addf %22, %26 : vector<8x1xf32>
    %c0_22 = arith.constant 0 : index
    %c0_23 = arith.constant 0 : index
    %28 = vector.load %arg9[%c0_22, %c0_23] : memref<8x1xf32, #tpu.memory_space<vmem>>, vector<8x1xf32>
    tpu.vector_store %arg9[%c0_22, %c0_23], %27 {strides = array<i32>} : memref<8x1xf32, #tpu.memory_space<vmem>>, vector<8x1xf32>,
    %c0_i32_24 = arith.constant 0 : i32
    %29 = arith.cmpi eq, %arg2, %c0_i32_24 : i32
    %30 = arith.extui %29 : i1 to i32
    %c0_i32_25 = arith.constant 0 : i32
    %31 = arith.cmpi ne, %30, %c0_i32_25 : i32
    scf.if %31 {
      %c0_26 = arith.constant 0 : index
      %c0_27 = arith.constant 0 : index
      %32 = vector.load %arg7[%c0_26, %c0_27] : memref<8x8xf32, #tpu.memory_space<vmem>>, vector<8x8xf32>
      %cst_28 = arith.constant 2.000000e+00 : f32
      %33 = vector.broadcast %cst_28 : f32 to vector<8x8xf32>
      %34 = arith.mulf %33, %32 : vector<8x8xf32>
      %c0_29 = arith.constant 0 : index
      %c0_30 = arith.constant 0 : index
      %35 = vector.load %arg9[%c0_29, %c0_30] : memref<8x1xf32, #tpu.memory_space<vmem>>, vector<8x1xf32>
      %c0_31 = arith.constant 0 : index
      %c0_32 = arith.constant 0 : index
      %36 = vector.load %arg8[%c0_31, %c0_32] : memref<1x8xf32, #tpu.memory_space<vmem>>, vector<1x8xf32>
      %37 = vector.broadcast %35 : vector<8x1xf32> to vector<8x8xf32>
      %38 = vector.broadcast %36 : vector<1x8xf32> to vector<8x8xf32>
      %39 = arith.addf %37, %38 : vector<8x8xf32>
      %cst_33 = arith.constant 9.99999974E-5 : f32
      %40 = vector.broadcast %cst_33 : f32 to vector<8x8xf32>
      %41 = arith.addf %39, %40 : vector<8x8xf32>
      %42 = arith.divf %34, %41 : vector<8x8xf32>
      %c0_34 = arith.constant 0 : index
      %c0_35 = arith.constant 0 : index
      %c0_36 = arith.constant 0 : index
      %c0_37 = arith.constant 0 : index
      %43 = vector.load %arg5[%c0_34, %c0_35, %c0_36, %c0_37] : memref<1x1x8x8xf32, #tpu.memory_space<vmem>>, vector<1x1x8x8xf32>
      %44 = vector.shape_cast %43 : vector<1x1x8x8xf32> to vector<8x8xf32>
      %45 = math.log %42 : vector<8x8xf32>
      %cst_38 = arith.constant 8.000000e-01 : f32
      %46 = vector.broadcast %cst_38 : f32 to vector<8x8xf32>
      %47 = arith.mulf %46, %45 : vector<8x8xf32>
      %48 = math.log %44 : vector<8x8xf32>
      %cst_39 = arith.constant 2.000000e-01 : f32
      %49 = vector.broadcast %cst_39 : f32 to vector<8x8xf32>
      %50 = arith.mulf %49, %48 : vector<8x8xf32>
      %51 = arith.addf %47, %50 : vector<8x8xf32>
      %52 = math.exp %51 : vector<8x8xf32>
      %c0_40 = arith.constant 0 : index
      %c0_41 = arith.constant 0 : index
      %c0_42 = arith.constant 0 : index
      %c0_43 = arith.constant 0 : index
      %53 = vector.load %arg6[%c0_40, %c0_41, %c0_42, %c0_43] : memref<1x1x8x8xf32, #tpu.memory_space<vmem>>, vector<1x1x8x8xf32>
      %54 = vector.shape_cast %53 : vector<1x1x8x8xf32> to vector<8x8xf32>
      %55 = vector.shape_cast %52 : vector<8x8xf32> to vector<1x1x8x8xf32>
      tpu.vector_store %arg6[%c0_40, %c0_41, %c0_42, %c0_43], %55 {strides = array<i32>} : memref<1x1x8x8xf32, #tpu.memory_space<vmem>>, vector<1x1x8x8xf32>,
    } else {
    }
    return
  }
  func.func @transform_0(%arg0: i32, %arg1: i32, %arg2: i32) -> (i32, i32, i32, i32) {
    %c0_i32 = arith.constant 0 : i32
    %c0_i32_0 = arith.constant 0 : i32
    return %arg0, %arg1, %c0_i32, %arg2 : i32, i32, i32, i32
  }
  func.func @transform_1(%arg0: i32, %arg1: i32, %arg2: i32) -> (i32, i32, i32) {
    %c0_i32 = arith.constant 0 : i32
    %c0_i32_0 = arith.constant 0 : i32
    return %arg0, %c0_i32, %arg2 : i32, i32, i32
  }
  func.func @transform_2(%arg0: i32, %arg1: i32, %arg2: i32) -> (i32, i32, i32, i32) {
    %c0_i32 = arith.constant 0 : i32
    %c0_i32_0 = arith.constant 0 : i32
    %c0_i32_1 = arith.constant 0 : i32
    return %arg0, %arg1, %c0_i32, %c0_i32_0 : i32, i32, i32, i32
  }
  func.func @transform_3(%arg0: i32, %arg1: i32, %arg2: i32) -> (i32, i32, i32, i32) {
    %c0_i32 = arith.constant 0 : i32
    %c0_i32_0 = arith.constant 0 : i32
    %c0_i32_1 = arith.constant 0 : i32
    return %arg0, %arg1, %c0_i32, %c0_i32_0 : i32, i32, i32, i32
  }
}

</mosaic_0001>

<bundles_post_ra>
// kernel: tpu_custom_call.1
= control target key start
LH: loop header
LB: loop body
LE: loop exit
PB: predicated region body
PF: predicated region fallthrough
CT: control target
= control target key end

     0   :  { %s1260_s0 = inlined_call_operand.hbm [shape: bf16[2,1,8,256], index: 0, kind: input, shape index: {}]   ;;  %s1261_s1 = inlined_call_operand.hbm [shape: bf16[2,8,256], index: 1, kind: input, shape index: {}]   ;;  %s1262_s2 = inlined_call_operand.hbm [shape: f32[2,1,8,8], index: 2, kind: input, shape index: {}]   ;;  %s1263_s3 = inlined_call_operand.hbm [shape: f32[2,1,8,8], index: 3, kind: output, shape index: {}]  }
   0x1   :  { %1269 = sst [smem:[#allocation19_spill]] %s1261_s1 }
   0x2   :  { %8 = vsyncpa [#allocation7], 0 }
   0x3   :  { %10 = vsyncpa [#allocation7 + $0x1], 0 }
   0x4   :  { %11 = vsyncpa [#allocation10], 0 }
   0x5   :  { %13 = vsyncpa [#allocation10 + $0x1], 0 }
   0x6   :  { %14 = vsyncpa [#allocation8], 0 }
   0x7   :  { %16 = vsyncpa [#allocation8 + $0x1], 0  ;;  %s983_s12 = smov 0   ;;  %s985_s13 = smov 0  }
   0x8   :  { %s987_s14 = smov 0   ;;  %s989_s15 = smov 0  }
   0x9   :  { %s991_s16 = smov 0   ;;  %s993_s17 = smov 0  }
   0xa LB: > { %1270 = sst [smem:[#allocation16_spill]] %s950_s16  ;;  %s1014_s18 = sadd.s32 4294967295, %s954_s17   ;;  %s954_s17 = sphi %s993_s17, %s22_s17   ;;  %s950_s16 = sphi %s991_s16, %s1293_s16   ;;  %s946_s15 = sphi %s989_s15, %s1292_s15   ;;  %s942_s14 = sphi %s987_s14, %s1296_s14   ;;  %s938_s13 = sphi %s985_s13, %s1295_s13   ;;  %s934_s12 = sphi %s983_s12, %s1294_s12  }
   0xb   : > { %s657_s19 = sadd.s32 4294967294, %s954_s17   ;;  %s41_s20 = sadd.s32 1, %s950_s16 }
   0xc   : > { %s52_s21 = sadd.s32 1, %s942_s14  ;;  %p43_p0 = scmp.ge.s32.totalorder %s41_s20, 2 }
   0xd   : > { %p59_p1 = scmp.ne.s32.totalorder %s942_s14, %s938_s13  ;;  %p60_p2 = scmp.eq.s32.totalorder %s954_s17, 0 }
   0xe   : > { %p65_p3 = scmp.ne.s32.totalorder %s938_s13, %s934_s12  ;;  %s1298_s20 = smov (%p43_p0, %s41_s20), 0 }
   0xf   : > { %1271 = sst [smem:[#allocation17_spill]] %s1298_s20  ;;  %p1026_p4 = por %p60_p2, %p59_p1 }
  0x10   : > { %p66_p5 = scmp.eq.s32.totalorder %s1014_s18, 0  ;;  %s45_s23 = ssub.s32 %s950_s16, %s1298_s20 }
  0x11   : > { %p147_p6 = scmp.eq.s32.totalorder %s1014_s18, 1  ;;  %p50_p7 = scmp.eq.s32.totalorder %s45_s23, 0 }
  0x12   : > { %p1034_p8 = por %p66_p5, %p65_p3  ;;  %p153_p10 = scmp.eq.s32.totalorder %s657_s19, 1 }
  0x13   : > { %p1038_p9 = por %p147_p6, %p59_p1  ;;  %p710_p13 = scmp.lt.s32.totalorder %s954_s17, 2 }
  0x14   : > { %s1273_s24 = scalar_select %p1034_p8, 1, 0 }
  0x15   : > { %s1274_s25 = scalar_select %p1038_p9, 1, 0 }
  0x16   : > { %s1043_s26 = scalar_select %p50_p7, %s942_s14, %s52_s21  }
  0x17   : > { %p1045_p11 = por %p153_p10, %p65_p3  ;;  %s173_s28 = sand.u32 1, %s942_s14  }
  0x18   : > { %1275 = sst [smem:[#allocation18_spill]] %s1043_s26  ;;  %s1054_s29 = sshll.u32 %s173_s28, 3 }
  0x19   : > { %s1276_s27 = scalar_select %p1045_p11, 1, 0 }
  0x1a   : > { %s1057_s30 = sshll.u32 %s950_s16, 7  ;;  %p1061_p0 = pnand %p710_p13, %p1026_p4 }
  0x1b   : > { %s196_s5 = sand.u32 1, %s954_s17   ;;  %s1278_s1 = sld [smem:[#allocation19_spill]] }
  0x1c   : > { %s1277_s4 = scalar_select %p1061_p0, 1, 0 }
  0x1d   : > { %s200_s9 = scalar_lea.vmem [#allocation9], %s1054_s29  ;;  %s1077_s11 = scalar_lea.sflag [#allocation10], %s196_s5 }
  0x1e   : > { %s210_s10 = sshll.u32 %s200_s9, 4  ;;  %p1083_p4 = pneg %p1061_p0  ;;  %s1074_s10 = int_to_ptr.vmem [resolvable:$true] %s210_s10 }
  0x21   : > { %s1070_s8 = scalar_lea.hbm %s1278_s1, %s1057_s30  ;;  %s783_s6 = scalar_lea.hbm %s1278_s1, 256 }
  0x22   : > { %s778_s19 = scalar_lea.hbm %s1070_s8, 128  ;;  %p784_p7 = scmp.lt.u32.totalorder %s1070_s8, %s1278_s1 }
  0x23   : > { %p779_p3 = scmp.ne.s32.totalorder %s1070_s8, %s778_s19  ;;  %p785_p10 = scmp.lt.u32.totalorder %s783_s6, %s778_s19 }
  0x24   : > { %p787_p12 = scmp.lt.u32.totalorder %s778_s19, %s1070_s8 }
  0x25   : > { %p781_p5 = pnand %p1083_p4, %p779_p3  ;;  %p786_p13 = por %p785_p10, %p784_p7 }
  0x27   : > { %p782_p6 = pneg %p781_p5  ;;  %p788_p1 = por %p787_p12, %p786_p13 }
  0x29   : > { %p789_p2 = pnand %p788_p1, %p782_p6 }
  0x2b   : > { %792 = shalt.err (!%p789_p2)
}
  0x2c   : > { %s793_s5 = scalar_lea.vmem %s1074_s10, 128  ;;  %s956_s22 = smov [#allocation9]  }
  0x2d   : > { %p794_p3 = scmp.ne.s32.totalorder %s1074_s10, %s793_s5  ;;  %s798_s23 = sshll.u32 %s956_s22, 4  ;;  %s799_s23 = int_to_ptr.vmem [resolvable:$false] %s798_s23 }
  0x2e   : > { %s800_s7 = scalar_lea.vmem %s799_s23, 256  ;;  %p801_p9 = scmp.lt.s32.totalorder %s1074_s10, %s799_s23 }
  0x2f   : > { %p796_p5 = pnand %p794_p3, %p1083_p4  ;;  %p802_p8 = scmp.lt.s32.totalorder %s800_s7, %s793_s5 }
  0x31   : > { %p797_p11 = pneg %p796_p5  ;;  %p803_p7 = por %p802_p8, %p801_p9 }
  0x33   : > { %p804_p10 = pnand %p803_p7, %p797_p11 }
  0x35   : > { %807 = shalt.err (!%p804_p10)
}
  0x36   : > { %702 = dma.hbm_to_vmem [thread:$0]  (!%p1061_p0), %s1070_s8, 128, %s1074_s10, %s1077_s11  }
  0x37   : > { %p1280_p12 = scmp.lt.s32.totalorder %s954_s17, 3  ;;  %p1281_p1 = scmp.ge.s32.totalorder %s954_s17, 1 }
  0x38   : > { %s1119_s5 = scalar_lea.hbm %s1260_s0, %s1057_s30  ;;  %s177_s22 = scalar_lea.vmem [#allocation6], %s1054_s29 }
  0x39   : > { %p1111_p2 = pnand %p1281_p1, %p1280_p12  ;;  %s189_s23 = sshll.u32 %s177_s22, 4  ;;  %s1122_s23 = int_to_ptr.vmem [resolvable:$true] %s189_s23 }
  0x3a   : > { %s1128_s7 = scalar_lea.hbm %s1262_s2, %s1057_s30  ;;  %s174_s1 = scalar_lea.sflag [#allocation7], %s173_s28 }
  0x3b   : > { %s1282_s19 = scalar_select %p1111_p2, 1, 0 }
  0x3c   : > { %s808_s20 = scalar_lea.hbm %s1119_s5, 128  ;;  %s813_s16 = scalar_lea.hbm %s1260_s0, 256 }
  0x3d   : > { %p809_p8 = scmp.ne.s32.totalorder %s1119_s5, %s808_s20  ;;  %p814_p6 = scmp.lt.u32.totalorder %s1119_s5, %s1260_s0 }
  0x3e   : > { %p815_p13 = scmp.lt.u32.totalorder %s813_s16, %s808_s20  ;;  %p817_p5 = scmp.lt.u32.totalorder %s808_s20, %s1119_s5 }
  0x3f   : > { %p811_p9 = pnand %p809_p8, %p1083_p4 }
  0x40   : > { %p816_p3 = por %p815_p13, %p814_p6 }
  0x41   : > { %p812_p11 = pneg %p811_p9 }
  0x42   : > { %p818_p7 = por %p817_p5, %p816_p3 }
  0x44   : > { %p819_p10 = pnand %p818_p7, %p812_p11 }
  0x46   : > { %822 = shalt.err (!%p819_p10)
}
  0x47   : > { %s823_s28 = scalar_lea.vmem %s1122_s23, 128  ;;  %s957_s30 = smov [#allocation6]  }
  0x48   : > { %p824_p12 = scmp.ne.s32.totalorder %s1122_s23, %s823_s28  ;;  %s828_s8 = sshll.u32 %s957_s30, 4  ;;  %s829_s8 = int_to_ptr.vmem [resolvable:$false] %s828_s8 }
  0x49   : > { %s830_s26 = scalar_lea.vmem %s829_s8, 256  ;;  %p831_p9 = scmp.lt.s32.totalorder %s1122_s23, %s829_s8 }
  0x4a   : > { %p826_p1 = pnand %p824_p12, %p1083_p4  ;;  %p832_p2 = scmp.lt.s32.totalorder %s830_s26, %s823_s28 }
  0x4c   : > { %p827_p8 = pneg %p826_p1  ;;  %p833_p6 = por %p832_p2, %p831_p9 }
  0x4e   : > { %p834_p13 = pnand %p833_p6, %p827_p8 }
  0x50   : > { %837 = shalt.err (!%p834_p13)
}
  0x51   : > { %699 = dma.hbm_to_vmem [thread:$0]  (!%p1061_p0), %s1119_s5, 128, %s1122_s23, %s174_s1  }
  0x52   : > { %s221_s16 = scalar_lea.vmem [#allocation11], %s1054_s29  ;;  %s838_s10 = scalar_lea.hbm %s1128_s7, 128 }
  0x53   : > { %s229_s20 = sshll.u32 %s221_s16, 4  ;;  %p839_p11 = scmp.ne.s32.totalorder %s1128_s7, %s838_s10  ;;  %s230_s20 = int_to_ptr.vmem [resolvable:$true] %s229_s20 }
  0x54   : > { %s843_s22 = scalar_lea.hbm %s1262_s2, 256  ;;  %p844_p5 = scmp.lt.u32.totalorder %s1128_s7, %s1262_s2 }
  0x55   : > { %p841_p2 = pnand %p839_p11, %p1083_p4  ;;  %p845_p7 = scmp.lt.u32.totalorder %s843_s22, %s838_s10 }
  0x56   : > { %p847_p12 = scmp.lt.u32.totalorder %s838_s10, %s1128_s7 }
  0x57   : > { %p842_p3 = pneg %p841_p2  ;;  %p846_p10 = por %p845_p7, %p844_p5 }
  0x59   : > { %p848_p1 = por %p847_p12, %p846_p10 }
  0x5b   : > { %p849_p8 = pnand %p848_p1, %p842_p3 }
  0x5d   : > { %852 = shalt.err (!%p849_p8)
}
  0x5e   : > { %s853_s1 = scalar_lea.vmem %s230_s20, 128  ;;  %s958_s29 = smov [#allocation11]  }
  0x5f   : > { %p854_p9 = scmp.ne.s32.totalorder %s230_s20, %s853_s1  ;;  %s858_s5 = sshll.u32 %s958_s29, 4  ;;  %s859_s5 = int_to_ptr.vmem [resolvable:$false] %s858_s5 }
  0x60   : > { %s860_s23 = scalar_lea.vmem %s859_s5, 256  ;;  %p861_p11 = scmp.lt.s32.totalorder %s230_s20, %s859_s5 }
  0x61   : > { %p856_p6 = pnand %p854_p9, %p1083_p4  ;;  %p862_p2 = scmp.lt.s32.totalorder %s860_s23, %s853_s1 }
  0x63   : > { %p857_p13 = pneg %p856_p6  ;;  %p863_p0 = por %p862_p2, %p861_p11 }
  0x65   : > { %p864_p5 = pnand %p863_p0, %p857_p13 }
  0x67   : > { %867 = shalt.err (!%p864_p5)
}
  0x68   : > { %p1283_p7 = scmp.ne.s32.totalorder %s1277_s4, 0  ;;  %p1284_p3 = scmp.ne.s32.totalorder %s1282_s19, 0 }
  0x69   : > { %s1175_s21 = sand.u32 (!%p1284_p3), 1, %s938_s13   ;;  %p1285_p0 = scmp.ne.s32.totalorder (!%p1284_p3), %s1273_s24, 0 }
  0x6a   : > { %705 = dma.hbm_to_vmem [thread:$0]  (!%p1283_p7), %s1128_s7, 128, %s230_s20, %s1077_s11  }
  0x6b   : > { %238 = sbr.rel (%p1284_p3) target bundleno = 467 (0x1d3), region = 32  ;;  %s1178_s8 = sshll.u32 (!%p1284_p3), %s1175_s21, 3 }
  0x6c   : > { %s241_s26 = scalar_lea.sflag (!%p1284_p3), [#allocation7], %s1175_s21  ;;  %s244_s16 = scalar_lea.vmem (!%p1284_p3), [#allocation6], %s1178_s8 }
  0x72   : > { %921 = dma.done.wait (%p1285_p0), %s241_s26, 128  }
  0x73   : > { %923 = vsyncadd (%p1285_p0), %s241_s26, 4294967168  ;;  %s249_s4 = sand.u32 1, %s1014_s18   ;;  %s253_s19 = scalar_lea.vmem [#allocation9], %s1178_s8 }
  0x74   : > { %s250_s11 = scalar_lea.sflag [#allocation10], %s249_s4 }
  0x75   : > { %925 = dma.done.wait (%p1285_p0), %s250_s11, 256  }
  0x76   : > { %927 = vsyncadd (%p1285_p0), %s250_s11, 4294967040  ;;  %vm309_vm0 = vcmask 1040384   ;;  %vm310_vm1 = vsmask.f32 256  ;;  %vm312_vm2 = vcmask 1041409   ;;  %vm307_vm5 = vcmask 7168  }
  0x77   : > { %vm1192_vm3 = vmand %vm309_vm0, %vm310_vm1  ;;  %vm313_vm4 = vsmask.f32 1280  ;;  %v959_v1 = vmov 0.0   ;;  %v327_v2 = vld [vmem:[%s253_s19] sm:$0xff]  ;;  %v319_v3 = vld [vmem:[%s244_s16] sm:$0xff]  ;;  %v401_v7 = vlaneseq  ;;  %v961_v23 = vmov 0  }
  0x78   : > { %vm314_vm6 = vmand %vm312_vm2, %vm313_vm4  ;;  %308 = vst.msk [vmem:[#allocation4] sm:$0xff] %vm307_vm5, %v959_v1  ;;  %v316_v4 = vld [vmem:[#allocation5] sm:$0x3]  ;;  %v960_v5 = vmov 1966171168   ;;  %v465_v8 = vmul.bf16 %v327_v2, %v327_v2  ;;  %v675_v11 = vcombine.high %v327_v2, %v327_v2  ;;  %763 = vset.pattern.permute.xlu0 %v961_v23  ;;  %vm305_vm8 = vcmask 57344  }
  0x79   : > { %vm315_vm7 = vmor %vm314_vm6, %vm1192_vm3  ;;  %v399_v6 = vunpack.c.l.s4 %v960_v5  ;;  %v673_v9 = vmul.bf16 3216621497, %v319_v3  ;;  %v402_v15 = vshrl.u32 %v401_v7, 7  ;;  %306 = vst.msk [vmem:[#allocation3] sm:$0x1] %vm305_vm8, %v959_v1  ;;  %v674_v31 = vcombine.low %v327_v2, %v327_v2  ;;  %s262_s18 = scalar_lea.vmem [#allocation11], %s1178_s8 }
  0x7a   : > { %v317_v10 = vsel %vm315_vm7, 1065369472, %v316_v4  ;;  %v466_v12 = vunpack.c.l.bf16 %v465_v8  ;;  %v467_v13 = vunpack.c.h.bf16 %v465_v8  ;;  %375 = vmatprep.mubr.bf16.mxu0 %v675_v11  ;;  %vm303_vm9 = vcmask 64512   ;;  %v496_v53 = vld [vmem:[%s262_s18] sm:$0xff]  ;;  %s683_s24 = sshll.u32 %s946_s15, 7  ;;  %s294_s7 = scalar_lea.vmem [#allocation12], %s1178_s8 }
  0x7b   : > { %318 = vst [vmem:[#allocation5] sm:$0x3] %v317_v10  ;;  %766 = vpow.bf16 %v673_v9  ;;  %v400_v14 = vunpack.c.0.s8 %v399_v6  ;;  %304 = vst.msk [vmem:[#allocation2] sm:$0xff] %vm303_vm9, %v959_v1  ;;  %s522_s20 = sshll.u32 %s294_s7, 4  ;;  %s1210_s9 = scalar_lea.hbm %s1263_s3, %s683_s24  ;;  %s1212_s20 = int_to_ptr.vmem [resolvable:$true] %s522_s20 }
  0x7c   : > { %v468_v16 = vadd.f32 %v467_v13, %v466_v12  ;;  %s508_s22 = scalar_lea.sflag [#allocation8], %s1175_s21  ;;  %s868_s28 = scalar_lea.vmem %s1212_s20, 128 }
  0x7d   : > { %v403_v17 = vsub.s32 %v400_v14, %v402_v15  ;;  %p869_p4 = scmp.ne.s32.totalorder %s1212_s20, %s868_s28  ;;  %p1288_p10 = scmp.ne.s32.totalorder %s1274_s25, 0 }
  0x7e   : > { %469 = vadd.xlane.f32.xlu0 %v468_v16  ;;  %s962_s15 = smov [#allocation12]  }
  0x7f   : > { %v464_v33 = vld [vmem:[#allocation4] sm:$0xff]  ;;  %p870_p12 = pnand %p869_p4, %p1288_p10  ;;  %s872_s30 = sshll.u32 %s962_s15, 4  ;;  %s873_s30 = int_to_ptr.vmem [resolvable:$false] %s872_s30 }
  0x80   : > { %v386_v38 = vld [vmem:[#allocation3] sm:$0x1]  ;;  %s874_s1 = scalar_lea.vmem %s873_s30, 256  ;;  %p875_p8 = scmp.lt.s32.totalorder %s1212_s20, %s873_s30 }
  0x81   : > { %p871_p1 = pneg %p870_p12  ;;  %p876_p9 = scmp.lt.s32.totalorder %s874_s1, %s868_s28 }
  0x82   : > { %v678_v18 = vld.sshfl [vmem:[#allocation5] sm:$0x11 pattern:$0x75316420]  ;;  %v328_v37 = vld [vmem:[#allocation2] sm:$0xff] }
  0x83   : > { %v397_v19 = vcombine.high %v678_v18, %v678_v18  ;;  %v404_v32 = vrot.slane %v678_v18, %v403_v17  ;;  %p877_p6 = por %p876_p9, %p875_p8 }
  0x85   : > { %v411_v20 = vrot.slane %v397_v19, %v403_v17  ;;  %p878_p13 = pnand %p877_p6, %p871_p1 }
  0x86   : > { %v767_v21 = vpop.eup %766 }
  0x87   : > { %453 = vmatprep.mubr.bf16.mxu1 %v411_v20  ;;  %v324_v22 = vadd.bf16 1065369472, %v767_v21 }
  0x89   : > { %768 = vrcp.bf16 %v324_v22 }
  0x94   : > { %v769_v24 = vpop.eup %768 }
  0x95   : > { %v326_v25 = vmul.bf16 1065369472, %v769_v24 }
  0x97   : > { %v388_v26 = vmul.bf16 %v326_v25, %v326_v25  ;;  %v677_v27 = vcombine.high %v326_v25, %v326_v25  ;;  %v676_v28 = vcombine.low %v326_v25, %v326_v25 }
  0x99   : > { %v680_v29 = vcombine.high %v388_v26, %v388_v26  ;;  %v679_v30 = vcombine.low %v388_v26, %v388_v26  ;;  %343 = vmatprep.subr.bf16.mxu0 %v677_v27 }
  0x9a   : > { %344 = vmatpush1.bf16.xpose.msra.mxu0 %v676_v28 }
  0x9b   : > { %421 = vmatprep.subr.bf16.mxu1 %v680_v29 }
  0x9c   : > { %422 = vmatpush1.bf16.xpose.msra.mxu1 %v679_v30 }
  0xa1   : > { %376 = vmatmul.mubr.bf16.vlgmr.msra.gmra.mrb[0].mxu0 %v674_v31 }
  0xa3   : > { %454 = vmatmul.mubr.bf16.vlgmr.msra.gmra.mrb[0].mxu1 %v404_v32 }
 0x10b   : > { %v470_v34 = vpop.xlane.xlu0 %469 }
 0x10c   : > { %v471_v35 = vadd.f32 %v470_v34, %v464_v33 }
 0x10e   : > { %473 = vst.msk [vmem:[#allocation4] sm:$0xff] %vm307_vm5, %v471_v35 }
 0x115   : > { %v479_v36 = vld [vmem:[#allocation4] sm:$0xff] }
 0x116   : > { %483 = vperm.xlu0 %763, %v479_v36  }
 0x174   : > { %v377_v39 = vpop.f32.mrb[0].mxu0 }
 0x175   : > { %v383_v40 = vadd.f32 %v377_v39, %v328_v37  ;;  %v379_v41 = vpop.f32.mrb[1].mxu0 }
 0x176   : > { %v455_v42 = vpop.f32.mrb[0].mxu1  ;;  %v380_v43 = vpop.f32.mrb[2].mxu0 }
 0x177   : > { %v461_v44 = vadd.f32 %v455_v42, %v386_v38  ;;  %v457_v45 = vpop.f32.mrb[1].mxu1  ;;  %385 = vst.msk [vmem:[#allocation2] sm:$0xff] %vm303_vm9, %v383_v40  ;;  %v381_v46 = vpop.f32.mrb[3].mxu0 }
 0x178   : > { %v458_v47 = vpop.f32.mrb[2].mxu1 }
 0x179   : > { %463 = vst.msk [vmem:[#allocation3] sm:$0x1] %vm305_vm8, %v461_v44  ;;  %v459_v48 = vpop.f32.mrb[3].mxu1 }
 0x17e   : > { %v477_v54 = vld [vmem:[#allocation2] sm:$0xff] }
 0x17f   : > { %v478_v55 = vmul.f32 2.0, %v477_v54 }
 0x180   : > { %v681_v49 = vld [vmem:[#allocation3] ss:$0 sm:$0xff] }
 0x195   : > { %v484_v50 = vpop.permute.xlu0 %483 }
 0x196   : > { %v492_v51 = vadd.f32 %v681_v49, %v484_v50 }
 0x198   : > { %v493_v52 = vadd.f32 0.0001, %v492_v51 }
 0x19a   : > { %770 = vrcp.f32 %v493_v52 }
 0x19b   : > { %772 = vlog2.f32 %v496_v53 }
 0x1a4   : > { %v771_v56 = vpop.eup %770 }
 0x1a5   : > { %v495_v57 = vmul.f32 %v771_v56, %v478_v55  ;;  %v773_v58 = vpop.eup %772 }
 0x1a6   : > { %v501_v59 = vmul.f32 0.6931472, %v773_v58 }
 0x1a7   : > { %774 = vlog2.f32 %v495_v57 }
 0x1a8   : > { %v502_v61 = vmul.f32 0.2, %v501_v59 }
 0x1b1   : > { %v775_v60 = vpop.eup %774 }
 0x1b2   : > { %v498_v62 = vmul.f32 0.6931472, %v775_v60 }
 0x1b4   : > { %v499_v63 = vmul.f32 0.8, %v498_v62 }
 0x1b6   : > { %v503_v0 = vadd.f32 %v502_v61, %v499_v63 }
 0x1b8   : > { %v504_v1 = vmul.f32 1.442695, %v503_v0 }
 0x1ba   : > { %776 = vpow2.f32 %v504_v1 }
 0x1c4   : > { %v777_v2 = vpop.eup %776 }
 0x1c5   : > { %506 = vst.msk [vmem:[%s294_s7] sm:$0xff] %vm303_vm9, %v777_v2 }
 0x1c6   : > { %881 = shalt.err (!%p878_p13)
}
 0x1c7   : > { %s882_s29 = scalar_lea.hbm %s1210_s9, 128  ;;  %s886_s21 = scalar_lea.hbm %s1263_s3, 256 }
 0x1c8   : > { %p883_p11 = scmp.ne.s32.totalorder %s1210_s9, %s882_s29  ;;  %p887_p7 = scmp.lt.u32.totalorder %s1210_s9, %s1263_s3 }
 0x1c9   : > { %p888_p3 = scmp.lt.u32.totalorder %s886_s21, %s882_s29  ;;  %p890_p4 = scmp.lt.u32.totalorder %s882_s29, %s1210_s9 }
 0x1ca   : > { %p884_p2 = pnand %p883_p11, %p1288_p10 }
 0x1cb   : > { %p889_p0 = por %p888_p3, %p887_p7 }
 0x1cc   : > { %p885_p5 = pneg %p884_p2 }
 0x1cd   : > { %p891_p12 = por %p890_p4, %p889_p0 }
 0x1cf   : > { %p892_p1 = pnand %p891_p12, %p885_p5 }
 0x1d1   : > { %895 = shalt.err (!%p892_p1)
}
 0x1d2   : > { %694 = dma.vmem_to_hbm [thread:$0]  (%p1288_p10), %s1212_s20, 128, %s1210_s9, %s508_s22  }
 0x1d3 PF: > { %s534_s16 = sand.u32 1, %s934_s12   ;;  %p1289_p8 = scmp.ne.s32.totalorder %s1276_s27, 0 }
 0x1d4   : > { %p1290_p9 = scmp.ge.s32.totalorder %s954_s17, 2  ;;  %s535_s4 = scalar_lea.sflag [#allocation8], %s534_s16 }
 0x1d6   : > { %p707_p6 = pnand %p1290_p9, %p1289_p8 }
 0x1d8   : > { %929 = dma.done.wait (!%p707_p6), %s535_s4, 128  }
 0x1d9   : > { %931 = vsyncadd (!%p707_p6), %s535_s4, 4294967168  ;;  %s22_s17 = sadd.s32 1, %s954_s17   ;;  %s1291_s25 = sld [smem:[#allocation18_spill]] }
 0x1da   : > { %p19_p13 = scmp.ge.s32.totalorder %s22_s17, 4   ;;  %s1292_s15 = sld [smem:[#allocation16_spill]] }
 0x1db   : > { %s1293_s16 = sld [smem:[#allocation17_spill]]  ;;  %s1294_s12 = smov %s938_s13 }
 0x1dc   : > { %s1295_s13 = smov %s942_s14  ;;  %21 = sbr.rel (!%p19_p13) target bundleno = 10 (0xa), region = 109 }
 0x1df   : > { %s1296_s14 = smov %s1291_s25 }
 0x1e3   :  { %540 = vsyncpa [#allocation7], 1 }
 0x1e4   :  { %542 = vsyncpa [#allocation7 + $0x1], 1 }
 0x1e5   :  { %543 = vsyncpa [#allocation10], 1 }
 0x1e6   :  { %545 = vsyncpa [#allocation10 + $0x1], 1 }
 0x1e7   :  { %546 = vsyncpa [#allocation8], 1 }
 0x1e8   :  { %548 = vsyncpa [#allocation8 + $0x1], 1 }

</bundles_post_ra>
